<compile_context>
chip_gen: v5e
topology: v5e:2x2
jax: 0.10.0
libtpu: 0.0.40
codegen_flags: <defaults>
</compile_context>

<pallas_src>
import jax
import jax.numpy as jnp
from jax.experimental import pallas as pl
from jax.experimental.pallas import tpu as pltpu


_LANE = 128   # vreg lane width


def _round_up(x, m):
    return ((x + m - 1) // m) * m


def _device_kind():
    try:
        return jax.devices()[0].device_kind.lower()
    except Exception:
        return ""


def _mlp_kernel(x_ref, w1_ref, b1_ref, w2_ref, b2_ref, o_ref):
    # x_ref:  (tm, D)      row tile of flattened particles (native dtype)
    # w1_ref: (D, Hp)      b1_ref: (1, Hp)   (bias in f32)
    # w2_ref: (Hp, O)      b2_ref: (1, O)    (bias in f32)
    # o_ref:  (tm, O)      native output width
    x = x_ref[...].astype(w1_ref.dtype)               # in-VMEM cast (VPU, ~free)
    h = jnp.dot(x, w1_ref[...], preferred_element_type=jnp.float32)
    h = jnp.maximum(h + b1_ref[...], 0.0)             # f32 bias + ReLU epilogue
    y = jnp.dot(h.astype(w2_ref.dtype), w2_ref[...],
                preferred_element_type=jnp.float32)
    y = jnp.maximum(y + b2_ref[...], 0.0)
    o_ref[...] = y.astype(o_ref.dtype)


def particle_encoder(x, w1, b1, w2, b2, *, tile_rows=8192,
                     compute_dtype=jnp.bfloat16):
    """
    Args:
        x:  [B, N, input_size]
        w1: [input_size, hidden_size]   (PyTorch linear1.weight.T)
        b1: [hidden_size]
        w2: [hidden_size, output_size]  (PyTorch linear2.weight.T)
        b2: [output_size]
        compute_dtype: dtype fed to the MXU (bf16 default; f32 accumulate and
            f32 bias/ReLU epilogue regardless).  Output dtype == x.dtype.
    Returns:
        [B, N, output_size]
    """
    B, N, D = x.shape
    H = w1.shape[1]
    O = w2.shape[1]
    rows = B * N

    out_dtype = x.dtype
    x_it = jnp.dtype(x.dtype).itemsize
    o_it = jnp.dtype(out_dtype).itemsize
    c_it = jnp.dtype(compute_dtype).itemsize

    # Hidden dim padded to full lanes — weights/bias only, never HBM activations.
    H_pad = _round_up(H, _LANE)

    # ---- generation-aware knobs -----------------------------------------
    kind = _device_kind()
    is_v7x = ("v7" in kind) or ("7x" in kind)
    if ("v5" in kind) or ("v6" in kind):
        vmem_budget = 96 * 1024 * 1024     # 128 MiB physical VMEM on v5e/v6e
    else:
        vmem_budget = 48 * 1024 * 1024     # v7x has only 64 MiB physical

    # Sublane multiple for the row-tile dim (f32 tiles: 8, bf16: 16, int8: 32).
    sub = max(32 // x_it, 32 // o_it, 8)

    # ---- choose row tile --------------------------------------------------
    tm = max(sub, _round_up(min(int(tile_rows), rows), sub))
    # v7x: ensure >= 2 row tiles so the "parallel" axis feeds both TensorCores.
    if is_v7x and pl.cdiv(rows, tm) == 1 and rows >= 2 * sub:
        tm = max(sub, _round_up(pl.cdiv(rows, 2), sub))

    def _tile_vmem_bytes(t):
        x_t = 2 * t * D * x_it                    # double-buffered input tile
        o_t = 2 * t * O * o_it                    # double-buffered output tile
        xc_t = t * D * c_it                       # cast copy of x
        h_t = t * H_pad * (4 + c_it)              # f32 intermediate + cast copy
        y_t = t * O * 4                           # f32 pre-store intermediate
        w_t = 2 * (D * H_pad + H_pad * O) * c_it + 2 * (H_pad + O) * 4
        return x_t + o_t + xc_t + h_t + y_t + w_t

    while tm > sub and _tile_vmem_bytes(tm) > vmem_budget:
        tm = max(sub, _round_up(tm // 2, sub))

    grid = (pl.cdiv(rows, tm),)   # ragged last block handled by Pallas (masked)

    # ---- wrapper-side layout plumbing (no HBM passes over activations) ----
    x2 = x.reshape(rows, D)                                   # free, row-major
    w1p = jnp.pad(w1, ((0, 0), (0, H_pad - H))).astype(compute_dtype)
    w2p = jnp.pad(w2, ((0, H_pad - H), (0, 0))).astype(compute_dtype)
    b1p = jnp.pad(b1.astype(jnp.float32), ((0, H_pad - H),)).reshape(1, H_pad)
    b2p = b2.astype(jnp.float32).reshape(1, O)

    cost = pl.CostEstimate(
        flops=2 * rows * (D * H_pad + H_pad * O),
        transcendentals=0,
        bytes_accessed=(rows * D * x_it + rows * O * o_it
                        + (D * H_pad + H_pad * O) * c_it
                        + (H_pad + O) * 4),
    )

    out = pl.pallas_call(
        _mlp_kernel,
        out_shape=jax.ShapeDtypeStruct((rows, O), out_dtype),
        grid_spec=pltpu.PrefetchScalarGridSpec(
            num_scalar_prefetch=0,
            grid=grid,
            in_specs=[
                pl.BlockSpec((tm, D), lambda i: (i, 0)),        # x row tile
                pl.BlockSpec((D, H_pad), lambda i: (0, 0)),     # W1 (resident)
                pl.BlockSpec((1, H_pad), lambda i: (0, 0)),     # b1 (resident)
                pl.BlockSpec((H_pad, O), lambda i: (0, 0)),     # W2 (resident)
                pl.BlockSpec((1, O), lambda i: (0, 0)),         # b2 (resident)
            ],
            out_specs=pl.BlockSpec((tm, O), lambda i: (i, 0)),  # native O width
        ),
        compiler_params=pltpu.CompilerParams(
            dimension_semantics=("parallel",),   # shards row tiles across TCs
            vmem_limit_bytes=vmem_budget,
        ),
        cost_estimate=cost,
    )(x2, w1p, b1p, w2p, b2p)

    return out.reshape(B, N, O)


def _reference(x, w1, b1, w2, b2):
    B, N, D = x.shape
    h = jnp.maximum(x.reshape(B * N, D) @ w1 + b1, 0.0)
    y = jnp.maximum(h @ w2 + b2, 0.0)
    return y.reshape(B, N, w2.shape[1])


if __name__ == "__main__":
    # Small shapes consistent with the module's forward.
    batch_size = 2
    n_particles = 8
    input_size = 16
    hidden_size = 32
    output_size = 32

    key = jax.random.PRNGKey(0)
    kx, k1, k2, k3, k4 = jax.random.split(key, 5)

    x = jax.random.normal(kx, (batch_size, n_particles, input_size), jnp.float32)

    # Deterministic synthetic parameters (stored as [in, out], i.e. weight.T).
    bound1 = 1.0 / (input_size ** 0.5)
    bound2 = 1.0 / (hidden_size ** 0.5)
    w1 = jax.random.uniform(k1, (input_size, hidden_size), jnp.float32,
                            -bound1, bound1)
    b1 = jax.random.uniform(k2, (hidden_size,), jnp.float32, -bound1, bound1)
    w2 = jax.random.uniform(k3, (hidden_size, output_size), jnp.float32,
                            -bound2, bound2)
    b2 = jax.random.uniform(k4, (output_size,), jnp.float32, -bound2, bound2)

    ref = _reference(x, w1, b1, w2, b2)

    # Default path: bf16 MXU, f32 accumulate + epilogue, f32 output.
    out_bf16 = jax.block_until_ready(particle_encoder(x, w1, b1, w2, b2))
    # Strict-numerics path: full f32 compute.
    out_f32 = jax.block_until_ready(
        particle_encoder(x, w1, b1, w2, b2, compute_dtype=jnp.float32))

    assert out_bf16.shape == (batch_size, n_particles, output_size)
    assert out_f32.shape == (batch_size, n_particles, output_size)
    assert jnp.allclose(out_f32, ref, atol=1e-5, rtol=1e-5), "f32 mismatch vs reference"
    assert jnp.allclose(out_bf16, ref, atol=3e-2, rtol=3e-2), "bf16 mismatch vs reference"

    print("KERNEL_OK")
</pallas_src>

<mosaic_0001>
module attributes {stable_mosaic.version = 11 : i64} {
  func.func @_mlp_kernel(%arg0: i32, %arg1: memref<16x16xf32, #tpu.memory_space<vmem>>, %arg2: memref<16x128xbf16, #tpu.memory_space<vmem>>, %arg3: memref<1x128xf32, #tpu.memory_space<vmem>>, %arg4: memref<128x32xbf16, #tpu.memory_space<vmem>>, %arg5: memref<1x32xf32, #tpu.memory_space<vmem>>, %arg6: memref<16x32xf32, #tpu.memory_space<vmem>>) attributes {dimension_semantics = [#tpu.dimension_semantics<parallel>], iteration_bounds = array<i64: 1>, scalar_prefetch = 0 : i64, scratch_operands = 0 : i64, tpu.core_type = #tpu.core_type<tc>, window_params = [{transform_indices = @transform_0, window_bounds = array<i64: 16, 16>}, {pipeline_mode = #tpu.pipeline_mode<synchronous>, transform_indices = @transform_1, window_bounds = array<i64: 16, 128>}, {pipeline_mode = #tpu.pipeline_mode<synchronous>, transform_indices = @transform_2, window_bounds = array<i64: 1, 128>}, {pipeline_mode = #tpu.pipeline_mode<synchronous>, transform_indices = @transform_3, window_bounds = array<i64: 128, 32>}, {pipeline_mode = #tpu.pipeline_mode<synchronous>, transform_indices = @transform_4, window_bounds = array<i64: 1, 32>}, {transform_indices = @transform_5, window_bounds = array<i64: 16, 32>}]} {
    %c0 = arith.constant 0 : index
    %c0_0 = arith.constant 0 : index
    %0 = vector.load %arg1[%c0, %c0_0] : memref<16x16xf32, #tpu.memory_space<vmem>>, vector<16x16xf32>
    %1 = arith.truncf %0 : vector<16x16xf32> to vector<16x16xbf16>
    %c0_1 = arith.constant 0 : index
    %c0_2 = arith.constant 0 : index
    %2 = vector.load %arg2[%c0_1, %c0_2] : memref<16x128xbf16, #tpu.memory_space<vmem>>, vector<16x128xbf16>
    %cst = arith.constant dense<0.000000e+00> : vector<16x128xf32>
    %3 = tpu.matmul %1, %2, %cst {dimension_numbers = #tpu.dot_dimension_numbers<[1], [0], [0], [1], [0, 0, 1, 1], [], []>} : vector<16x16xbf16>, vector<16x128xbf16>, vector<16x128xf32> -> vector<16x128xf32>
    %c0_3 = arith.constant 0 : index
    %c0_4 = arith.constant 0 : index
    %4 = vector.load %arg3[%c0_3, %c0_4] : memref<1x128xf32, #tpu.memory_space<vmem>>, vector<1x128xf32>
    %5 = vector.broadcast %4 : vector<1x128xf32> to vector<16x128xf32>
    %6 = arith.addf %3, %5 : vector<16x128xf32>
    %cst_5 = arith.constant 0.000000e+00 : f32
    %7 = vector.broadcast %cst_5 : f32 to vector<16x128xf32>
    %8 = arith.maximumf %6, %7 : vector<16x128xf32>
    %9 = arith.truncf %8 : vector<16x128xf32> to vector<16x128xbf16>
    %c0_6 = arith.constant 0 : index
    %c0_7 = arith.constant 0 : index
    %10 = vector.load %arg4[%c0_6, %c0_7] : memref<128x32xbf16, #tpu.memory_space<vmem>>, vector<128x32xbf16>
    %cst_8 = arith.constant dense<0.000000e+00> : vector<16x32xf32>
    %11 = tpu.matmul %9, %10, %cst_8 {dimension_numbers = #tpu.dot_dimension_numbers<[1], [0], [0], [1], [0, 0, 1, 1], [], []>} : vector<16x128xbf16>, vector<128x32xbf16>, vector<16x32xf32> -> vector<16x32xf32>
    %c0_9 = arith.constant 0 : index
    %c0_10 = arith.constant 0 : index
    %12 = vector.load %arg5[%c0_9, %c0_10] : memref<1x32xf32, #tpu.memory_space<vmem>>, vector<1x32xf32>
    %13 = vector.broadcast %12 : vector<1x32xf32> to vector<16x32xf32>
    %14 = arith.addf %11, %13 : vector<16x32xf32>
    %cst_11 = arith.constant 0.000000e+00 : f32
    %15 = vector.broadcast %cst_11 : f32 to vector<16x32xf32>
    %16 = arith.maximumf %14, %15 : vector<16x32xf32>
    %c0_12 = arith.constant 0 : index
    %c0_13 = arith.constant 0 : index
    %17 = vector.load %arg6[%c0_12, %c0_13] : memref<16x32xf32, #tpu.memory_space<vmem>>, vector<16x32xf32>
    tpu.vector_store %arg6[%c0_12, %c0_13], %16 {strides = array<i32>} : memref<16x32xf32, #tpu.memory_space<vmem>>, vector<16x32xf32>,
    return
  }
  func.func @transform_0(%arg0: i32) -> (i32, i32) {
    %c0_i32 = arith.constant 0 : i32
    %c0_i32_0 = arith.constant 0 : i32
    return %arg0, %c0_i32 : i32, i32
  }
  func.func @transform_1(%arg0: i32) -> (i32, i32) {
    %c0_i32 = arith.constant 0 : i32
    %c0_i32_0 = arith.constant 0 : i32
    %c0_i32_1 = arith.constant 0 : i32
    return %c0_i32, %c0_i32_0 : i32, i32
  }
  func.func @transform_2(%arg0: i32) -> (i32, i32) {
    %c0_i32 = arith.constant 0 : i32
    %c0_i32_0 = arith.constant 0 : i32
    %c0_i32_1 = arith.constant 0 : i32
    return %c0_i32, %c0_i32_0 : i32, i32
  }
  func.func @transform_3(%arg0: i32) -> (i32, i32) {
    %c0_i32 = arith.constant 0 : i32
    %c0_i32_0 = arith.constant 0 : i32
    %c0_i32_1 = arith.constant 0 : i32
    return %c0_i32, %c0_i32_0 : i32, i32
  }
  func.func @transform_4(%arg0: i32) -> (i32, i32) {
    %c0_i32 = arith.constant 0 : i32
    %c0_i32_0 = arith.constant 0 : i32
    %c0_i32_1 = arith.constant 0 : i32
    return %c0_i32, %c0_i32_0 : i32, i32
  }
  func.func @transform_5(%arg0: i32) -> (i32, i32) {
    %c0_i32 = arith.constant 0 : i32
    %c0_i32_0 = arith.constant 0 : i32
    return %arg0, %c0_i32 : i32, i32
  }
}

</mosaic_0001>

<bundles_post_ra>
// kernel: tpu_custom_call.1
= control target key start
LH: loop header
LB: loop body
LE: loop exit
PB: predicated region body
PF: predicated region fallthrough
CT: control target
= control target key end

     0   :  { %vm37_vm0 = vcmask 130048   ;;  %s315_s0 = inlined_call_operand.vmem [shape: f32[16,16], index: 0, kind: input, shape index: {}]   ;;  %s316_s1 = inlined_call_operand.vmem [shape: bf16[16,128], index: 1, kind: input, shape index: {}]   ;;  %s317_s2 = inlined_call_operand.vmem [shape: f32[1,128], index: 2, kind: input, shape index: {}]   ;;  %s318_s3 = inlined_call_operand.vmem [shape: bf16[128,32], index: 3, kind: input, shape index: {}]   ;;  %s319_s4 = inlined_call_operand.vmem [shape: f32[1,32], index: 4, kind: input, shape index: {}]   ;;  %s320_s5 = inlined_call_operand.hbm [shape: f32[16,32], index: 5, kind: output, shape index: {}]  }
   0x1   :  { %v200_v0 = vld [vmem:[%s316_s1] sm:$0xff]  ;;  %v23_v2 = vld [vmem:[%s315_s0 + $0x8] sm:$0xff]  ;;  %v208_v4 = vld [vmem:[%s318_s3 + $0x38] sm:$0xff] }
   0x2   :  { %v22_v1 = vld [vmem:[%s315_s0] sm:$0xff]  ;;  %48 = vmatpush.bf16.msra.mxu0 %v200_v0  ;;  %126 = vmatpush.bf16.msra.mxu1 %v208_v4  ;;  %v207_v5 = vld [vmem:[%s318_s3 + $0x30] sm:$0xff] }
   0x3   :  { %v24_v3 = vpack.c.bf16 %v23_v2, %v22_v1 }
   0x4   :  { %10 = vsyncpa [#allocation3], 0  ;;  %v206_v6 = vld [vmem:[%s318_s3 + $0x28] sm:$0xff]  ;;  %v205_v7 = vld [vmem:[%s318_s3 + $0x20] sm:$0xff]  ;;  %vm142_vm1 = vcmask 261120   ;;  %s151_s19 = sshll.u32 %s320_s5, 4  ;;  %s152_s19 = int_to_ptr.hbm [resolvable:$true] %s151_s19 }
   0x5   :  { %167 = vmatmul.msk.bf16.vlgmr.msra.gmra.mxu0 %vm37_vm0, %v24_v3  ;;  %v204_v8 = vld [vmem:[%s318_s3 + $0x18] sm:$0xff]  ;;  %v203_v9 = vld [vmem:[%s318_s3 + $0x10] sm:$0xff]  ;;  %v202_v10 = vld [vmem:[%s318_s3 + $0x8] sm:$0xff]  ;;  %s241_s20 = smov 128   ;;  %s242_s21 = smov 8  }
   0x6   :  { %127 = vmatpush.bf16.msra.mxu1 %v207_v5  ;;  %v201_v11 = vld [vmem:[%s318_s3] sm:$0xff]  ;;  %s240_s3 = smov [#allocation2]  }
   0x7   :  { %v212_v13 = vld [vmem:[%s317_s2] ss:$0 sm:$0xff]  ;;  %s149_s17 = sshll.u32 %s240_s3, 4  ;;  %s150_s17 = int_to_ptr.vmem [resolvable:$true] %s149_s17 }
   0x8   :  { %v213_v20 = vld [vmem:[%s319_s4] ss:$0 sm:$0xff] }
   0xa   :  { %128 = vmatpush.bf16.msra.mxu1 %v206_v6 }
   0xe   :  { %129 = vmatpush.bf16.msra.mxu1 %v205_v7 }
  0x12   :  { %130 = vmatpush.bf16.msra.mxu1 %v204_v8 }
  0x16   :  { %131 = vmatpush.bf16.msra.mxu1 %v203_v9 }
  0x1a   :  { %132 = vmatpush.bf16.msra.mxu1 %v202_v10 }
  0x1e   :  { %133 = vmatpush.bf16.msra.mxu1 %v201_v11 }
  0x82   :  { %v50_v12 = vpop.f32.mrf.mxu0 }
  0x83   :  { %v51_v14 = vadd.f32 %v212_v13, %v50_v12 }
  0x85   :  { %v55_v17 = vmax.f32 %v51_v14, 0.0 }
  0x8a   :  { %v52_v15 = vpop.f32.mrf.mxu0 }
  0x8b   :  { %v53_v16 = vadd.f32 %v212_v13, %v52_v15 }
  0x8d   :  { %v56_v18 = vmax.f32 %v53_v16, 0.0 }
  0x8f   :  { %v57_v19 = vpack.c.bf16 %v56_v18, %v55_v17 }
  0x91   :  { %134 = vmatmul.bf16.vlgmr.msra.gmra.mxu1 %v57_v19 }
 0x10e   :  { %v135_v21 = vpop.f32.mrf.mxu1 }
 0x10f   :  { %v136_v22 = vadd.f32 %v213_v20, %v135_v21 }
 0x111   :  { %v140_v23 = vmax.f32 %v136_v22, 0.0 }
 0x113   :  { %143 = vst.msk [vmem:[#allocation2] sm:$0xff] %vm142_vm1, %v140_v23 }
 0x116   :  { %v137_v24 = vpop.f32.mrf.mxu1 }
 0x117   :  { %v138_v25 = vadd.f32 %v213_v20, %v137_v24 }
 0x119   :  { %v141_v26 = vmax.f32 %v138_v25, 0.0 }
 0x11b   :  { %144 = vst.msk [vmem:[#allocation2 + $0x8] sm:$0xff] %vm142_vm1, %v141_v26 }
 0x11c   :  { %157 = dma.vmem_to_hbm [thread:$0]  %s150_s17, 256, %s152_s19, [#allocation3], %s241_s20, %s241_s20, %s242_s21  }
 0x11d   :  { %238 = dma.done.wait [#allocation3], 256  }
 0x11e   :  { %239 = vsyncadd [#allocation3], 4294967040 }
 0x11f   :  { %162 = vsyncpa [#allocation3], 1 }

</bundles_post_ra>
